<compile_context>
chip_gen: v7x
topology: tpu7x:2x2x1
jax: 0.10.0
libtpu: 0.0.40
codegen_flags: <defaults>
</compile_context>

<pallas_src>
import functools

import jax
import jax.numpy as jnp
from jax import lax
from jax.experimental import pallas as pl
from jax.experimental.pallas import tpu as pltpu

_INV_SQRT2 = 0.7071067811865476
_MIB = 1024 * 1024


def _gelu_exact(x):
    # PyTorch nn.GELU() default = exact erf formulation.
    return 0.5 * x * (1.0 + lax.erf(x * _INV_SQRT2))


# ---------------------------------------------------------------------------
# Kernel
# ---------------------------------------------------------------------------
def _mlpblock_kernel(
    x_ref,        # (Bt, Np, D)   input dtype
    alpha1_ref,   # (1, D)  f32
    beta1_ref,    # (1, D)  f32
    wtok_ref,     # (Np, Np)      matmul dtype
    btok_ref,     # (Np, 1) f32
    alpha2_ref,   # (1, D)  f32
    beta2_ref,    # (1, D)  f32
    w1_ref,       # (n_chunks, D, hc)  matmul dtype  (Linear(dim, mlp_dim) W^T, H-split)
    b1_ref,       # (n_chunks, 1, hc)  f32
    w2_ref,       # (n_chunks, hc, D)  matmul dtype  (Linear(mlp_dim, dim) W^T, H-split)
    b2_ref,       # (1, D)  f32
    g1_ref,       # (1, D)  f32
    g2_ref,       # (1, D)  f32
    o_ref,        # (Bt, Np, D)
    x3_scr,       # VMEM scratch (Bt, Np, D) f32
    *,
    matmul_dtype,        # None -> f32 MXU operands; jnp.bfloat16 for perf runs
    gelu_approximate,    # False -> exact erf (matches PyTorch nn.GELU default)
):
    Bt, Np, D = x_ref.shape
    n_chunks = w1_ref.shape[0]
    M = Bt * Np

    cast = (lambda v: v) if matmul_dtype is None else (
        lambda v: v.astype(matmul_dtype))
    if gelu_approximate:
        gelu = lambda v: jax.nn.gelu(v, approximate=True)   # tanh -> EUP slot
    else:
        gelu = _gelu_exact

    # Grid-invariant (1, D) rows: load once, reuse everywhere (hoisted).
    alpha1, beta1 = alpha1_ref[...], beta1_ref[...]
    alpha2, beta2 = alpha2_ref[...], beta2_ref[...]
    g1, g2 = g1_ref[...], g2_ref[...]
    wtok = wtok_ref[...]
    gb = g1 * btok_ref[...]   # (Np, D): gamma1 * conv bias, hoisted out of the b-loop

    # ---- pre_affine -> token mix (Conv1d k=1 over patches) -> residual ->
    #      post_affine, one batch element at a time, written straight into a
    #      VMEM scratch (no concatenate / relayout copies). ----
    def token_body(b, carry):
        x1 = x_ref[b].astype(jnp.float32) * alpha1 + beta1            # (Np, D)
        tm = jnp.dot(wtok, cast(x1), preferred_element_type=jnp.float32)
        x3_scr[b] = (x1 + g1 * tm + gb) * alpha2 + beta2
        return carry

    lax.fori_loop(0, Bt, token_body, 0, unroll=Bt <= 8)

    # ---- FeedForward on the flat (M, D) slab: Linear(D->H) -> GELU ->
    #      Linear(H->D), fori_loop over pre-split H chunks, f32 accumulator. ----
    x3 = x3_scr[...].reshape(M, D)       # free: Np is a multiple of 8
    x3_mm = cast(x3)                     # matmul-operand cast hoisted out of the loop

    def ff_body(c, acc):
        h = jnp.dot(x3_mm, w1_ref[c], preferred_element_type=jnp.float32)
        h = gelu(h + b1_ref[c])                                       # f32 elementwise
        return acc + jnp.dot(cast(h), w2_ref[c],
                             preferred_element_type=jnp.float32)

    ff = lax.fori_loop(0, n_chunks, ff_body,
                       jnp.zeros((M, D), jnp.float32), unroll=n_chunks <= 8)
    ff = ff + b2_ref[...]

    out = x3 + g2 * ff
    o_ref[...] = out.reshape(Bt, Np, D).astype(o_ref.dtype)


# ---------------------------------------------------------------------------
# Generation-aware tile / VMEM planning (static shapes only)
# ---------------------------------------------------------------------------
def _vmem_budget_bytes():
    try:
        cap = int(pltpu.get_tpu_info().vmem_capacity_bytes)
    except Exception:
        cap = 64 * _MIB                      # conservative: v7x per-TensorCore VMEM
    cap = min(max(cap, 64 * _MIB), 128 * _MIB)
    # ~48 MiB on 64 MiB parts (v7x), ~96 MiB on 128 MiB parts (v5e / v6e).
    return max(32 * _MIB, min(int(cap * 0.75), cap - 16 * _MIB))


def _batch_tile_candidates(B, max_tile):
    divs = [d for d in range(1, B + 1) if B % d == 0 and d <= max_tile]
    # Prefer tiles giving an even grid length >= 2 (feeds both v7x TCs), then
    # any grid >= 2, then the rest; within each group prefer the largest tile.
    even = [d for d in divs if (B // d) >= 2 and (B // d) % 2 == 0]
    ge2 = [d for d in divs if (B // d) >= 2 and d not in even]
    rest = [d for d in divs if d not in even and d not in ge2]
    return (sorted(even, reverse=True) + sorted(ge2, reverse=True)
            + sorted(rest, reverse=True))


def _h_chunk_candidates(H, target):
    divs = [c for c in range(1, H + 1) if H % c == 0 and c <= target]
    mul128 = [c for c in divs if c % 128 == 0]
    rest = [c for c in divs if c % 128 != 0]
    return sorted(mul128, reverse=True) + sorted(rest, reverse=True)


def _estimate_vmem_bytes(Bt, Np, D, H, hc, io_item, w_item):
    M = Bt * Np
    # Resident params: assume worst-case double buffering so that a fallback
    # from Buffered(1) to the default pipeline can never blow the budget.
    weights = 2 * ((Np * Np + 2 * D * H) * w_item
                   + (2 * Np + 2 * H + 12 * D) * 4)
    io = 2 * (M * D * io_item) * 2            # x in + out blocks, double-buffered
    scratch = M * D * 4                        # x3 VMEM scratch
    live = 3 * M * D * 4                       # x3 value + ff accumulator + out temp
    hidden = M * hc * 6                        # (M, hc) GELU activation (+ cast copy)
    return weights + io + scratch + live + hidden + _MIB


def _plan_tiles(B, Np, D, H, io_item, w_item, budget, batch_tile, h_chunk):
    big = budget >= 96 * _MIB                  # 128 MiB parts: open up the tiles
    bt_cands = ([batch_tile] if batch_tile is not None
                else _batch_tile_candidates(B, 16 if big else 8))
    hc_cands = ([h_chunk] if h_chunk is not None
                else _h_chunk_candidates(H, 2048 if big else 1024))
    for bt in bt_cands:
        for hc in hc_cands:
            if _estimate_vmem_bytes(bt, Np, D, H, hc, io_item, w_item) <= budget:
                return bt, hc
    return min(bt_cands), min(hc_cands)       # most frugal, best effort


# ---------------------------------------------------------------------------
# Wrapper
# ---------------------------------------------------------------------------
@functools.partial(
    jax.jit,
    static_argnames=("matmul_dtype", "gelu_approximate", "batch_tile",
                     "h_chunk", "single_buffer_weights"),
)
def mlpblock_forward(x, params, *, matmul_dtype=jnp.bfloat16,
                     gelu_approximate=False, batch_tile=None, h_chunk=None,
                     single_buffer_weights=True):
    """Fused ResMLP MLPblock forward.

    matmul_dtype=jnp.bfloat16 (default) feeds the MXU with bf16 operands and
    accumulates in f32; matmul_dtype=None is a bit-tight f32 verification path.
    """
    B, N, D = x.shape
    H = params["w1"].shape[1]
    Np = ((N + 7) // 8) * 8     # pad patches to a sublane multiple -> free reshapes

    wtok, btok = params["w_tok"], params["b_tok"]
    x_in = x
    if Np != N:
        x_in = jnp.pad(x, ((0, 0), (0, Np - N), (0, 0)))
        wtok = jnp.pad(wtok, ((0, Np - N), (0, Np - N)))   # zero cols: padding can't leak in
        btok = jnp.pad(btok, ((0, Np - N), (0, 0)))

    w1, w2 = params["w1"], params["w2"]
    if matmul_dtype is not None:
        # Halve resident-weight VMEM and HBM traffic; dots still accumulate in
        # f32 via preferred_element_type inside the kernel.
        wtok = wtok.astype(matmul_dtype)
        w1 = w1.astype(matmul_dtype)
        w2 = w2.astype(matmul_dtype)

    io_item = x.dtype.itemsize
    w_item = jnp.dtype(jnp.float32 if matmul_dtype is None else matmul_dtype).itemsize
    budget = _vmem_budget_bytes()
    if batch_tile is not None:
        assert B % batch_tile == 0, "batch_tile must divide the batch size"
    if h_chunk is not None:
        assert H % h_chunk == 0, "h_chunk must divide mlp_dim"
    Bt, hc = _plan_tiles(B, Np, D, H, io_item, w_item, budget, batch_tile, h_chunk)
    n_chunks = H // hc

    # Pre-split the FF weights along the hidden axis in the wrapper so the
    # kernel only ever indexes the leading (chunk) axis dynamically (no
    # dynamic lane-dim slicing inside the kernel).
    w1r = w1.reshape(D, n_chunks, hc).transpose(1, 0, 2)             # (nc, D, hc)
    b1r = params["b1"].reshape(1, n_chunks, hc).transpose(1, 0, 2)   # (nc, 1, hc)
    w2r = w2.reshape(n_chunks, hc, D)                                # (nc, hc, D)

    def const_spec(shape):
        # Grid-invariant operand: constant index_map; single-buffer it so it is
        # not needlessly double-buffered.  The VMEM plan already assumes
        # double-buffered weights, so a fallback cannot exceed the budget.
        kwargs = {}
        if single_buffer_weights and hasattr(pl, "Buffered"):
            kwargs["pipeline_mode"] = pl.Buffered(1)
        return pl.BlockSpec(shape, lambda b: tuple(0 for _ in shape), **kwargs)

    kernel = functools.partial(_mlpblock_kernel, matmul_dtype=matmul_dtype,
                               gelu_approximate=gelu_approximate)

    operands = (
        x_in,
        params["alpha1"], params["beta1"],
        wtok, btok,
        params["alpha2"], params["beta2"],
        w1r, b1r,
        w2r, params["b2"],
        params["gamma1"], params["gamma2"],
    )

    param_bytes = sum(int(a.size) * a.dtype.itemsize for a in operands[1:])
    io_bytes = 2 * int(x_in.size) * x_in.dtype.itemsize
    cost = pl.CostEstimate(
        flops=2 * B * Np * Np * D + 4 * B * Np * D * H,
        transcendentals=B * Np * H,
        bytes_accessed=param_bytes + io_bytes,
    )

    out = pl.pallas_call(
        kernel,
        out_shape=jax.ShapeDtypeStruct((B, Np, D), x.dtype),
        grid_spec=pltpu.PrefetchScalarGridSpec(
            num_scalar_prefetch=0,
            grid=(B // Bt,),
            in_specs=[
                pl.BlockSpec((Bt, Np, D), lambda b: (b, 0, 0)),  # x (pipelined)
                const_spec((1, D)),             # alpha1
                const_spec((1, D)),             # beta1
                const_spec((Np, Np)),           # W_tok
                const_spec((Np, 1)),            # b_tok
                const_spec((1, D)),             # alpha2
                const_spec((1, D)),             # beta2
                const_spec((n_chunks, D, hc)),  # W1 (H-split)
                const_spec((n_chunks, 1, hc)),  # b1 (H-split)
                const_spec((n_chunks, hc, D)),  # W2 (H-split)
                const_spec((1, D)),             # b2
                const_spec((1, D)),             # gamma_1
                const_spec((1, D)),             # gamma_2
            ],
            out_specs=pl.BlockSpec((Bt, Np, D), lambda b: (b, 0, 0)),
            scratch_shapes=[pltpu.VMEM((Bt, Np, D), jnp.float32)],
        ),
        compiler_params=pltpu.CompilerParams(
            dimension_semantics=("parallel",),
            vmem_limit_bytes=int(budget),
        ),
        cost_estimate=cost,
    )(*operands)

    if Np != N:
        out = out[:, :N, :]
    return out


# ---------------------------------------------------------------------------
# Params + pure-JAX reference
# ---------------------------------------------------------------------------
def init_params(key, num_patch, dim, mlp_dim, depth=18, dtype=jnp.float32):
    if depth <= 18:
        init_values = 0.1
    elif depth <= 24:
        init_values = 1e-5
    else:
        init_values = 1e-6

    ks = jax.random.split(key, 6)
    # Conv1d(num_patch, num_patch, 1): weight (out, in, 1) -> (N, N), bias (N,)
    w_tok = jax.random.normal(ks[0], (num_patch, num_patch), dtype) * 0.02
    b_tok = jax.random.normal(ks[1], (num_patch, 1), dtype) * 0.02
    # Linear(dim, mlp_dim): PyTorch weight (mlp_dim, dim) -> stored transposed
    w1 = jax.random.normal(ks[2], (dim, mlp_dim), dtype) * 0.02
    b1 = jax.random.normal(ks[3], (1, mlp_dim), dtype) * 0.02
    # Linear(mlp_dim, dim): stored transposed
    w2 = jax.random.normal(ks[4], (mlp_dim, dim), dtype) * 0.02
    b2 = jax.random.normal(ks[5], (1, dim), dtype) * 0.02

    return dict(
        alpha1=jnp.ones((1, dim), dtype),
        beta1=jnp.zeros((1, dim), dtype),
        w_tok=w_tok,
        b_tok=b_tok,
        alpha2=jnp.ones((1, dim), dtype),
        beta2=jnp.zeros((1, dim), dtype),
        w1=w1,
        b1=b1,
        w2=w2,
        b2=b2,
        gamma1=jnp.full((1, dim), init_values, dtype),
        gamma2=jnp.full((1, dim), init_values, dtype),
    )


def reference_forward(x, p):
    """Pure-JAX reference mirroring the PyTorch module."""
    x1 = x * p["alpha1"][None] + p["beta1"][None]
    tm = jnp.einsum("pq,bqd->bpd", p["w_tok"], x1) + p["b_tok"][None]
    x2 = x1 + p["gamma1"][None] * tm
    x3 = x2 * p["alpha2"][None] + p["beta2"][None]
    h = _gelu_exact(jnp.einsum("bnd,dh->bnh", x3, p["w1"]) + p["b1"][None])
    ff = jnp.einsum("bnh,hd->bnd", h, p["w2"]) + p["b2"][None]
    return x3 + p["gamma2"][None] * ff


if __name__ == "__main__":
    B, N, D, H = 2, 8, 32, 64   # batch, num_patch, dim, mlp_dim

    key = jax.random.PRNGKey(0)
    kx, kp = jax.random.split(key)
    x = jax.random.normal(kx, (B, N, D), jnp.float32)
    params = init_params(kp, num_patch=N, dim=D, mlp_dim=H, depth=18)
    ref = reference_forward(x, params)

    def run(**kw):
        try:
            return jax.block_until_ready(mlpblock_forward(x, params, **kw))
        except Exception:
            # Guarded fallback only if this jax build rejects single-buffered
            # (Buffered(1)) BlockSpecs; the VMEM plan already assumes
            # double-buffered weights so this cannot exceed the budget.
            return jax.block_until_ready(
                mlpblock_forward(x, params, single_buffer_weights=False, **kw))

    # Bit-tight f32 MXU path vs the pure-JAX reference.
    out_f32 = run(matmul_dtype=None)
    assert out_f32.shape == (B, N, D)
    assert jnp.allclose(out_f32, ref, atol=1e-5, rtol=1e-5), "f32 path mismatch"

    # Default perf path: bf16 MXU operands, f32 accumulation + f32 elementwise.
    out_bf16 = run()
    assert out_bf16.shape == (B, N, D)
    assert jnp.allclose(out_bf16, ref, atol=2e-2, rtol=2e-2), "bf16 path mismatch"

    print("KERNEL_OK")
</pallas_src>

<mosaic_0001>
module attributes {stable_mosaic.version = 11 : i64} {
  func.func @_mlpblock_kernel(%arg0: i32, %arg1: memref<1x8x32xf32, #tpu.memory_space<vmem>>, %arg2: memref<1x32xf32, #tpu.memory_space<vmem>>, %arg3: memref<1x32xf32, #tpu.memory_space<vmem>>, %arg4: memref<8x8xf32, #tpu.memory_space<vmem>>, %arg5: memref<8x1xf32, #tpu.memory_space<vmem>>, %arg6: memref<1x32xf32, #tpu.memory_space<vmem>>, %arg7: memref<1x32xf32, #tpu.memory_space<vmem>>, %arg8: memref<1x32x64xf32, #tpu.memory_space<vmem>>, %arg9: memref<1x1x64xf32, #tpu.memory_space<vmem>>, %arg10: memref<1x64x32xf32, #tpu.memory_space<vmem>>, %arg11: memref<1x32xf32, #tpu.memory_space<vmem>>, %arg12: memref<1x32xf32, #tpu.memory_space<vmem>>, %arg13: memref<1x32xf32, #tpu.memory_space<vmem>>, %arg14: memref<1x8x32xf32, #tpu.memory_space<vmem>>, %arg15: memref<1x8x32xf32, #tpu.memory_space<vmem>>) attributes {dimension_semantics = [#tpu.dimension_semantics<parallel>], iteration_bounds = array<i64: 2>, scalar_prefetch = 0 : i64, scratch_operands = 1 : i64, tpu.core_type = #tpu.core_type<tc>, window_params = [{transform_indices = @transform_0, window_bounds = array<i64: 1, 8, 32>}, {pipeline_mode = #tpu.pipeline_mode<synchronous>, transform_indices = @transform_1, window_bounds = array<i64: 1, 32>}, {pipeline_mode = #tpu.pipeline_mode<synchronous>, transform_indices = @transform_2, window_bounds = array<i64: 1, 32>}, {pipeline_mode = #tpu.pipeline_mode<synchronous>, transform_indices = @transform_3, window_bounds = array<i64: 8, 8>}, {pipeline_mode = #tpu.pipeline_mode<synchronous>, transform_indices = @transform_4, window_bounds = array<i64: 8, 1>}, {pipeline_mode = #tpu.pipeline_mode<synchronous>, transform_indices = @transform_5, window_bounds = array<i64: 1, 32>}, {pipeline_mode = #tpu.pipeline_mode<synchronous>, transform_indices = @transform_6, window_bounds = array<i64: 1, 32>}, {pipeline_mode = #tpu.pipeline_mode<synchronous>, transform_indices = @transform_7, window_bounds = array<i64: 1, 32, 64>}, {pipeline_mode = #tpu.pipeline_mode<synchronous>, transform_indices = @transform_8, window_bounds = array<i64: 1, 1, 64>}, {pipeline_mode = #tpu.pipeline_mode<synchronous>, transform_indices = @transform_9, window_bounds = array<i64: 1, 64, 32>}, {pipeline_mode = #tpu.pipeline_mode<synchronous>, transform_indices = @transform_10, window_bounds = array<i64: 1, 32>}, {pipeline_mode = #tpu.pipeline_mode<synchronous>, transform_indices = @transform_11, window_bounds = array<i64: 1, 32>}, {pipeline_mode = #tpu.pipeline_mode<synchronous>, transform_indices = @transform_12, window_bounds = array<i64: 1, 32>}, {transform_indices = @transform_13, window_bounds = array<i64: 1, 8, 32>}]} {
    %c0 = arith.constant 0 : index
    %c0_0 = arith.constant 0 : index
    %0 = vector.load %arg2[%c0, %c0_0] : memref<1x32xf32, #tpu.memory_space<vmem>>, vector<1x32xf32>
    %c0_1 = arith.constant 0 : index
    %c0_2 = arith.constant 0 : index
    %1 = vector.load %arg3[%c0_1, %c0_2] : memref<1x32xf32, #tpu.memory_space<vmem>>, vector<1x32xf32>
    %c0_3 = arith.constant 0 : index
    %c0_4 = arith.constant 0 : index
    %2 = vector.load %arg6[%c0_3, %c0_4] : memref<1x32xf32, #tpu.memory_space<vmem>>, vector<1x32xf32>
    %c0_5 = arith.constant 0 : index
    %c0_6 = arith.constant 0 : index
    %3 = vector.load %arg7[%c0_5, %c0_6] : memref<1x32xf32, #tpu.memory_space<vmem>>, vector<1x32xf32>
    %c0_7 = arith.constant 0 : index
    %c0_8 = arith.constant 0 : index
    %4 = vector.load %arg12[%c0_7, %c0_8] : memref<1x32xf32, #tpu.memory_space<vmem>>, vector<1x32xf32>
    %c0_9 = arith.constant 0 : index
    %c0_10 = arith.constant 0 : index
    %5 = vector.load %arg13[%c0_9, %c0_10] : memref<1x32xf32, #tpu.memory_space<vmem>>, vector<1x32xf32>
    %c0_11 = arith.constant 0 : index
    %c0_12 = arith.constant 0 : index
    %6 = vector.load %arg4[%c0_11, %c0_12] : memref<8x8xf32, #tpu.memory_space<vmem>>, vector<8x8xf32>
    %c0_13 = arith.constant 0 : index
    %c0_14 = arith.constant 0 : index
    %7 = vector.load %arg5[%c0_13, %c0_14] : memref<8x1xf32, #tpu.memory_space<vmem>>, vector<8x1xf32>
    %8 = vector.broadcast %4 : vector<1x32xf32> to vector<8x32xf32>
    %9 = vector.broadcast %7 : vector<8x1xf32> to vector<8x32xf32>
    %10 = arith.mulf %8, %9 : vector<8x32xf32>
    %c0_i32 = arith.constant 0 : i32
    %11 = arith.index_cast %c0_i32 : i32 to index
    %c0_15 = arith.constant 0 : index
    %c0_16 = arith.constant 0 : index
    %12 = vector.load %arg1[%11, %c0_15, %c0_16] : memref<1x8x32xf32, #tpu.memory_space<vmem>>, vector<1x8x32xf32>
    %13 = vector.shape_cast %12 : vector<1x8x32xf32> to vector<8x32xf32>
    %14 = vector.broadcast %0 : vector<1x32xf32> to vector<8x32xf32>
    %15 = arith.mulf %13, %14 : vector<8x32xf32>
    %16 = vector.broadcast %1 : vector<1x32xf32> to vector<8x32xf32>
    %17 = arith.addf %15, %16 : vector<8x32xf32>
    %cst = arith.constant dense<0.000000e+00> : vector<8x32xf32>
    %18 = tpu.matmul %6, %17, %cst {dimension_numbers = #tpu.dot_dimension_numbers<[1], [0], [0], [1], [0, 0, 1, 1], [], []>} : vector<8x8xf32>, vector<8x32xf32>, vector<8x32xf32> -> vector<8x32xf32>
    %19 = vector.broadcast %4 : vector<1x32xf32> to vector<8x32xf32>
    %20 = arith.mulf %19, %18 : vector<8x32xf32>
    %21 = arith.addf %17, %20 : vector<8x32xf32>
    %22 = arith.addf %21, %10 : vector<8x32xf32>
    %23 = vector.broadcast %2 : vector<1x32xf32> to vector<8x32xf32>
    %24 = arith.mulf %22, %23 : vector<8x32xf32>
    %25 = vector.broadcast %3 : vector<1x32xf32> to vector<8x32xf32>
    %26 = arith.addf %24, %25 : vector<8x32xf32>
    %27 = arith.index_cast %c0_i32 : i32 to index
    %c0_17 = arith.constant 0 : index
    %c0_18 = arith.constant 0 : index
    %28 = vector.load %arg15[%27, %c0_17, %c0_18] : memref<1x8x32xf32, #tpu.memory_space<vmem>>, vector<1x8x32xf32>
    %29 = vector.shape_cast %28 : vector<1x8x32xf32> to vector<8x32xf32>
    %30 = vector.shape_cast %26 : vector<8x32xf32> to vector<1x8x32xf32>
    tpu.vector_store %arg15[%27, %c0_17, %c0_18], %30 {strides = array<i32>} : memref<1x8x32xf32, #tpu.memory_space<vmem>>, vector<1x8x32xf32>,
    %c1_i32 = arith.constant 1 : i32
    %c0_19 = arith.constant 0 : index
    %c0_20 = arith.constant 0 : index
    %c0_21 = arith.constant 0 : index
    %31 = vector.load %arg15[%c0_19, %c0_20, %c0_21] : memref<1x8x32xf32, #tpu.memory_space<vmem>>, vector<1x8x32xf32>
    %32 = vector.shape_cast %31 : vector<1x8x32xf32> to vector<8x32xf32>
    %cst_22 = arith.constant 0.000000e+00 : f32
    %33 = vector.broadcast %cst_22 : f32 to vector<8x32xf32>
    %c0_i32_23 = arith.constant 0 : i32
    %34 = arith.index_cast %c0_i32_23 : i32 to index
    %c0_24 = arith.constant 0 : index
    %c0_25 = arith.constant 0 : index
    %35 = vector.load %arg8[%34, %c0_24, %c0_25] : memref<1x32x64xf32, #tpu.memory_space<vmem>>, vector<1x32x64xf32>
    %36 = vector.shape_cast %35 : vector<1x32x64xf32> to vector<32x64xf32>
    %cst_26 = arith.constant dense<0.000000e+00> : vector<8x64xf32>
    %37 = tpu.matmul %32, %36, %cst_26 {dimension_numbers = #tpu.dot_dimension_numbers<[1], [0], [0], [1], [0, 0, 1, 1], [], []>} : vector<8x32xf32>, vector<32x64xf32>, vector<8x64xf32> -> vector<8x64xf32>
    %38 = arith.index_cast %c0_i32_23 : i32 to index
    %c0_27 = arith.constant 0 : index
    %c0_28 = arith.constant 0 : index
    %39 = vector.load %arg9[%38, %c0_27, %c0_28] : memref<1x1x64xf32, #tpu.memory_space<vmem>>, vector<1x1x64xf32>
    %40 = vector.shape_cast %39 : vector<1x1x64xf32> to vector<1x64xf32>
    %41 = vector.broadcast %40 : vector<1x64xf32> to vector<8x64xf32>
    %42 = arith.addf %37, %41 : vector<8x64xf32>
    %cst_29 = arith.constant 5.000000e-01 : f32
    %43 = vector.broadcast %cst_29 : f32 to vector<8x64xf32>
    %44 = arith.mulf %43, %42 : vector<8x64xf32>
    %cst_30 = arith.constant 0.707106769 : f32
    %45 = vector.broadcast %cst_30 : f32 to vector<8x64xf32>
    %46 = arith.mulf %42, %45 : vector<8x64xf32>
    %47 = math.erf %46 : vector<8x64xf32>
    %cst_31 = arith.constant 1.000000e+00 : f32
    %48 = vector.broadcast %cst_31 : f32 to vector<8x64xf32>
    %49 = arith.addf %48, %47 : vector<8x64xf32>
    %50 = arith.mulf %44, %49 : vector<8x64xf32>
    %51 = arith.index_cast %c0_i32_23 : i32 to index
    %c0_32 = arith.constant 0 : index
    %c0_33 = arith.constant 0 : index
    %52 = vector.load %arg10[%51, %c0_32, %c0_33] : memref<1x64x32xf32, #tpu.memory_space<vmem>>, vector<1x64x32xf32>
    %53 = vector.shape_cast %52 : vector<1x64x32xf32> to vector<64x32xf32>
    %cst_34 = arith.constant dense<0.000000e+00> : vector<8x32xf32>
    %54 = tpu.matmul %50, %53, %cst_34 {dimension_numbers = #tpu.dot_dimension_numbers<[1], [0], [0], [1], [0, 0, 1, 1], [], []>} : vector<8x64xf32>, vector<64x32xf32>, vector<8x32xf32> -> vector<8x32xf32>
    %55 = arith.addf %33, %54 : vector<8x32xf32>
    %c1_i32_35 = arith.constant 1 : i32
    %c0_36 = arith.constant 0 : index
    %c0_37 = arith.constant 0 : index
    %56 = vector.load %arg11[%c0_36, %c0_37] : memref<1x32xf32, #tpu.memory_space<vmem>>, vector<1x32xf32>
    %57 = vector.broadcast %56 : vector<1x32xf32> to vector<8x32xf32>
    %58 = arith.addf %55, %57 : vector<8x32xf32>
    %59 = vector.broadcast %5 : vector<1x32xf32> to vector<8x32xf32>
    %60 = arith.mulf %59, %58 : vector<8x32xf32>
    %61 = arith.addf %32, %60 : vector<8x32xf32>
    %62 = vector.shape_cast %61 : vector<8x32xf32> to vector<1x8x32xf32>
    %c0_38 = arith.constant 0 : index
    %c0_39 = arith.constant 0 : index
    %c0_40 = arith.constant 0 : index
    %63 = vector.load %arg14[%c0_38, %c0_39, %c0_40] : memref<1x8x32xf32, #tpu.memory_space<vmem>>, vector<1x8x32xf32>
    tpu.vector_store %arg14[%c0_38, %c0_39, %c0_40], %62 {strides = array<i32>} : memref<1x8x32xf32, #tpu.memory_space<vmem>>, vector<1x8x32xf32>,
    return
  }
  func.func @transform_0(%arg0: i32) -> (i32, i32, i32) {
    %c0_i32 = arith.constant 0 : i32
    %c0_i32_0 = arith.constant 0 : i32
    %c0_i32_1 = arith.constant 0 : i32
    return %arg0, %c0_i32, %c0_i32_0 : i32, i32, i32
  }
  func.func @transform_1(%arg0: i32) -> (i32, i32) {
    %c0_i32 = arith.constant 0 : i32
    %c0_i32_0 = arith.constant 0 : i32
    %c0_i32_1 = arith.constant 0 : i32
    return %c0_i32, %c0_i32_0 : i32, i32
  }
  func.func @transform_2(%arg0: i32) -> (i32, i32) {
    %c0_i32 = arith.constant 0 : i32
    %c0_i32_0 = arith.constant 0 : i32
    %c0_i32_1 = arith.constant 0 : i32
    return %c0_i32, %c0_i32_0 : i32, i32
  }
  func.func @transform_3(%arg0: i32) -> (i32, i32) {
    %c0_i32 = arith.constant 0 : i32
    %c0_i32_0 = arith.constant 0 : i32
    %c0_i32_1 = arith.constant 0 : i32
    return %c0_i32, %c0_i32_0 : i32, i32
  }
  func.func @transform_4(%arg0: i32) -> (i32, i32) {
    %c0_i32 = arith.constant 0 : i32
    %c0_i32_0 = arith.constant 0 : i32
    %c0_i32_1 = arith.constant 0 : i32
    return %c0_i32, %c0_i32_0 : i32, i32
  }
  func.func @transform_5(%arg0: i32) -> (i32, i32) {
    %c0_i32 = arith.constant 0 : i32
    %c0_i32_0 = arith.constant 0 : i32
    %c0_i32_1 = arith.constant 0 : i32
    return %c0_i32, %c0_i32_0 : i32, i32
  }
  func.func @transform_6(%arg0: i32) -> (i32, i32) {
    %c0_i32 = arith.constant 0 : i32
    %c0_i32_0 = arith.constant 0 : i32
    %c0_i32_1 = arith.constant 0 : i32
    return %c0_i32, %c0_i32_0 : i32, i32
  }
  func.func @transform_7(%arg0: i32) -> (i32, i32, i32) {
    %c0_i32 = arith.constant 0 : i32
    %c0_i32_0 = arith.constant 0 : i32
    %c0_i32_1 = arith.constant 0 : i32
    %c0_i32_2 = arith.constant 0 : i32
    return %c0_i32, %c0_i32_0, %c0_i32_1 : i32, i32, i32
  }
  func.func @transform_8(%arg0: i32) -> (i32, i32, i32) {
    %c0_i32 = arith.constant 0 : i32
    %c0_i32_0 = arith.constant 0 : i32
    %c0_i32_1 = arith.constant 0 : i32
    %c0_i32_2 = arith.constant 0 : i32
    return %c0_i32, %c0_i32_0, %c0_i32_1 : i32, i32, i32
  }
  func.func @transform_9(%arg0: i32) -> (i32, i32, i32) {
    %c0_i32 = arith.constant 0 : i32
    %c0_i32_0 = arith.constant 0 : i32
    %c0_i32_1 = arith.constant 0 : i32
    %c0_i32_2 = arith.constant 0 : i32
    return %c0_i32, %c0_i32_0, %c0_i32_1 : i32, i32, i32
  }
  func.func @transform_10(%arg0: i32) -> (i32, i32) {
    %c0_i32 = arith.constant 0 : i32
    %c0_i32_0 = arith.constant 0 : i32
    %c0_i32_1 = arith.constant 0 : i32
    return %c0_i32, %c0_i32_0 : i32, i32
  }
  func.func @transform_11(%arg0: i32) -> (i32, i32) {
    %c0_i32 = arith.constant 0 : i32
    %c0_i32_0 = arith.constant 0 : i32
    %c0_i32_1 = arith.constant 0 : i32
    return %c0_i32, %c0_i32_0 : i32, i32
  }
  func.func @transform_12(%arg0: i32) -> (i32, i32) {
    %c0_i32 = arith.constant 0 : i32
    %c0_i32_0 = arith.constant 0 : i32
    %c0_i32_1 = arith.constant 0 : i32
    return %c0_i32, %c0_i32_0 : i32, i32
  }
  func.func @transform_13(%arg0: i32) -> (i32, i32, i32) {
    %c0_i32 = arith.constant 0 : i32
    %c0_i32_0 = arith.constant 0 : i32
    %c0_i32_1 = arith.constant 0 : i32
    return %arg0, %c0_i32, %c0_i32_0 : i32, i32, i32
  }
}

module attributes {stable_mosaic.version = 11 : i64} {
  func.func @_mlpblock_kernel(%arg0: i32, %arg1: memref<1x8x32xf32, #tpu.memory_space<vmem>>, %arg2: memref<1x32xf32, #tpu.memory_space<vmem>>, %arg3: memref<1x32xf32, #tpu.memory_space<vmem>>, %arg4: memref<8x8xf32, #tpu.memory_space<vmem>>, %arg5: memref<8x1xf32, #tpu.memory_space<vmem>>, %arg6: memref<1x32xf32, #tpu.memory_space<vmem>>, %arg7: memref<1x32xf32, #tpu.memory_space<vmem>>, %arg8: memref<1x32x64xf32, #tpu.memory_space<vmem>>, %arg9: memref<1x1x64xf32, #tpu.memory_space<vmem>>, %arg10: memref<1x64x32xf32, #tpu.memory_space<vmem>>, %arg11: memref<1x32xf32, #tpu.memory_space<vmem>>, %arg12: memref<1x32xf32, #tpu.memory_space<vmem>>, %arg13: memref<1x32xf32, #tpu.memory_space<vmem>>, %arg14: memref<1x8x32xf32, #tpu.memory_space<vmem>>, %arg15: memref<1x8x32xf32, #tpu.memory_space<vmem>>) attributes {dimension_semantics = [#tpu.dimension_semantics<parallel>], iteration_bounds = array<i64: 2>, scalar_prefetch = 0 : i64, scratch_operands = 1 : i64, tpu.core_type = #tpu.core_type<tc>, window_params = [{transform_indices = @transform_0, window_bounds = array<i64: 1, 8, 32>}, {pipeline_mode = #tpu.pipeline_mode<synchronous>, transform_indices = @transform_1, window_bounds = array<i64: 1, 32>}, {pipeline_mode = #tpu.pipeline_mode<synchronous>, transform_indices = @transform_2, window_bounds = array<i64: 1, 32>}, {pipeline_mode = #tpu.pipeline_mode<synchronous>, transform_indices = @transform_3, window_bounds = array<i64: 8, 8>}, {pipeline_mode = #tpu.pipeline_mode<synchronous>, transform_indices = @transform_4, window_bounds = array<i64: 8, 1>}, {pipeline_mode = #tpu.pipeline_mode<synchronous>, transform_indices = @transform_5, window_bounds = array<i64: 1, 32>}, {pipeline_mode = #tpu.pipeline_mode<synchronous>, transform_indices = @transform_6, window_bounds = array<i64: 1, 32>}, {pipeline_mode = #tpu.pipeline_mode<synchronous>, transform_indices = @transform_7, window_bounds = array<i64: 1, 32, 64>}, {pipeline_mode = #tpu.pipeline_mode<synchronous>, transform_indices = @transform_8, window_bounds = array<i64: 1, 1, 64>}, {pipeline_mode = #tpu.pipeline_mode<synchronous>, transform_indices = @transform_9, window_bounds = array<i64: 1, 64, 32>}, {pipeline_mode = #tpu.pipeline_mode<synchronous>, transform_indices = @transform_10, window_bounds = array<i64: 1, 32>}, {pipeline_mode = #tpu.pipeline_mode<synchronous>, transform_indices = @transform_11, window_bounds = array<i64: 1, 32>}, {pipeline_mode = #tpu.pipeline_mode<synchronous>, transform_indices = @transform_12, window_bounds = array<i64: 1, 32>}, {transform_indices = @transform_13, window_bounds = array<i64: 1, 8, 32>}]} {
    %c0 = arith.constant 0 : index
    %c0_0 = arith.constant 0 : index
    %0 = vector.load %arg2[%c0, %c0_0] : memref<1x32xf32, #tpu.memory_space<vmem>>, vector<1x32xf32>
    %c0_1 = arith.constant 0 : index
    %c0_2 = arith.constant 0 : index
    %1 = vector.load %arg3[%c0_1, %c0_2] : memref<1x32xf32, #tpu.memory_space<vmem>>, vector<1x32xf32>
    %c0_3 = arith.constant 0 : index
    %c0_4 = arith.constant 0 : index
    %2 = vector.load %arg6[%c0_3, %c0_4] : memref<1x32xf32, #tpu.memory_space<vmem>>, vector<1x32xf32>
    %c0_5 = arith.constant 0 : index
    %c0_6 = arith.constant 0 : index
    %3 = vector.load %arg7[%c0_5, %c0_6] : memref<1x32xf32, #tpu.memory_space<vmem>>, vector<1x32xf32>
    %c0_7 = arith.constant 0 : index
    %c0_8 = arith.constant 0 : index
    %4 = vector.load %arg12[%c0_7, %c0_8] : memref<1x32xf32, #tpu.memory_space<vmem>>, vector<1x32xf32>
    %c0_9 = arith.constant 0 : index
    %c0_10 = arith.constant 0 : index
    %5 = vector.load %arg13[%c0_9, %c0_10] : memref<1x32xf32, #tpu.memory_space<vmem>>, vector<1x32xf32>
    %c0_11 = arith.constant 0 : index
    %c0_12 = arith.constant 0 : index
    %6 = vector.load %arg4[%c0_11, %c0_12] : memref<8x8xf32, #tpu.memory_space<vmem>>, vector<8x8xf32>
    %c0_13 = arith.constant 0 : index
    %c0_14 = arith.constant 0 : index
    %7 = vector.load %arg5[%c0_13, %c0_14] : memref<8x1xf32, #tpu.memory_space<vmem>>, vector<8x1xf32>
    %8 = vector.broadcast %4 : vector<1x32xf32> to vector<8x32xf32>
    %9 = vector.broadcast %7 : vector<8x1xf32> to vector<8x32xf32>
    %10 = arith.mulf %8, %9 : vector<8x32xf32>
    %c0_i32 = arith.constant 0 : i32
    %11 = arith.index_cast %c0_i32 : i32 to index
    %c0_15 = arith.constant 0 : index
    %c0_16 = arith.constant 0 : index
    %12 = vector.load %arg1[%11, %c0_15, %c0_16] : memref<1x8x32xf32, #tpu.memory_space<vmem>>, vector<1x8x32xf32>
    %13 = vector.shape_cast %12 : vector<1x8x32xf32> to vector<8x32xf32>
    %14 = vector.broadcast %0 : vector<1x32xf32> to vector<8x32xf32>
    %15 = arith.mulf %13, %14 : vector<8x32xf32>
    %16 = vector.broadcast %1 : vector<1x32xf32> to vector<8x32xf32>
    %17 = arith.addf %15, %16 : vector<8x32xf32>
    %cst = arith.constant dense<0.000000e+00> : vector<8x32xf32>
    %18 = tpu.matmul %6, %17, %cst {dimension_numbers = #tpu.dot_dimension_numbers<[1], [0], [0], [1], [0, 0, 1, 1], [], []>} : vector<8x8xf32>, vector<8x32xf32>, vector<8x32xf32> -> vector<8x32xf32>
    %19 = vector.broadcast %4 : vector<1x32xf32> to vector<8x32xf32>
    %20 = arith.mulf %19, %18 : vector<8x32xf32>
    %21 = arith.addf %17, %20 : vector<8x32xf32>
    %22 = arith.addf %21, %10 : vector<8x32xf32>
    %23 = vector.broadcast %2 : vector<1x32xf32> to vector<8x32xf32>
    %24 = arith.mulf %22, %23 : vector<8x32xf32>
    %25 = vector.broadcast %3 : vector<1x32xf32> to vector<8x32xf32>
    %26 = arith.addf %24, %25 : vector<8x32xf32>
    %27 = arith.index_cast %c0_i32 : i32 to index
    %c0_17 = arith.constant 0 : index
    %c0_18 = arith.constant 0 : index
    %28 = vector.load %arg15[%27, %c0_17, %c0_18] : memref<1x8x32xf32, #tpu.memory_space<vmem>>, vector<1x8x32xf32>
    %29 = vector.shape_cast %28 : vector<1x8x32xf32> to vector<8x32xf32>
    %30 = vector.shape_cast %26 : vector<8x32xf32> to vector<1x8x32xf32>
    tpu.vector_store %arg15[%27, %c0_17, %c0_18], %30 {strides = array<i32>} : memref<1x8x32xf32, #tpu.memory_space<vmem>>, vector<1x8x32xf32>,
    %c1_i32 = arith.constant 1 : i32
    %c0_19 = arith.constant 0 : index
    %c0_20 = arith.constant 0 : index
    %c0_21 = arith.constant 0 : index
    %31 = vector.load %arg15[%c0_19, %c0_20, %c0_21] : memref<1x8x32xf32, #tpu.memory_space<vmem>>, vector<1x8x32xf32>
    %32 = vector.shape_cast %31 : vector<1x8x32xf32> to vector<8x32xf32>
    %cst_22 = arith.constant 0.000000e+00 : f32
    %33 = vector.broadcast %cst_22 : f32 to vector<8x32xf32>
    %c0_i32_23 = arith.constant 0 : i32
    %34 = arith.index_cast %c0_i32_23 : i32 to index
    %c0_24 = arith.constant 0 : index
    %c0_25 = arith.constant 0 : index
    %35 = vector.load %arg8[%34, %c0_24, %c0_25] : memref<1x32x64xf32, #tpu.memory_space<vmem>>, vector<1x32x64xf32>
    %36 = vector.shape_cast %35 : vector<1x32x64xf32> to vector<32x64xf32>
    %cst_26 = arith.constant dense<0.000000e+00> : vector<8x64xf32>
    %37 = tpu.matmul %32, %36, %cst_26 {dimension_numbers = #tpu.dot_dimension_numbers<[1], [0], [0], [1], [0, 0, 1, 1], [], []>} : vector<8x32xf32>, vector<32x64xf32>, vector<8x64xf32> -> vector<8x64xf32>
    %38 = arith.index_cast %c0_i32_23 : i32 to index
    %c0_27 = arith.constant 0 : index
    %c0_28 = arith.constant 0 : index
    %39 = vector.load %arg9[%38, %c0_27, %c0_28] : memref<1x1x64xf32, #tpu.memory_space<vmem>>, vector<1x1x64xf32>
    %40 = vector.shape_cast %39 : vector<1x1x64xf32> to vector<1x64xf32>
    %41 = vector.broadcast %40 : vector<1x64xf32> to vector<8x64xf32>
    %42 = arith.addf %37, %41 : vector<8x64xf32>
    %cst_29 = arith.constant 5.000000e-01 : f32
    %43 = vector.broadcast %cst_29 : f32 to vector<8x64xf32>
    %44 = arith.mulf %43, %42 : vector<8x64xf32>
    %cst_30 = arith.constant 0.707106769 : f32
    %45 = vector.broadcast %cst_30 : f32 to vector<8x64xf32>
    %46 = arith.mulf %42, %45 : vector<8x64xf32>
    %47 = math.erf %46 : vector<8x64xf32>
    %cst_31 = arith.constant 1.000000e+00 : f32
    %48 = vector.broadcast %cst_31 : f32 to vector<8x64xf32>
    %49 = arith.addf %48, %47 : vector<8x64xf32>
    %50 = arith.mulf %44, %49 : vector<8x64xf32>
    %51 = arith.index_cast %c0_i32_23 : i32 to index
    %c0_32 = arith.constant 0 : index
    %c0_33 = arith.constant 0 : index
    %52 = vector.load %arg10[%51, %c0_32, %c0_33] : memref<1x64x32xf32, #tpu.memory_space<vmem>>, vector<1x64x32xf32>
    %53 = vector.shape_cast %52 : vector<1x64x32xf32> to vector<64x32xf32>
    %cst_34 = arith.constant dense<0.000000e+00> : vector<8x32xf32>
    %54 = tpu.matmul %50, %53, %cst_34 {dimension_numbers = #tpu.dot_dimension_numbers<[1], [0], [0], [1], [0, 0, 1, 1], [], []>} : vector<8x64xf32>, vector<64x32xf32>, vector<8x32xf32> -> vector<8x32xf32>
    %55 = arith.addf %33, %54 : vector<8x32xf32>
    %c1_i32_35 = arith.constant 1 : i32
    %c0_36 = arith.constant 0 : index
    %c0_37 = arith.constant 0 : index
    %56 = vector.load %arg11[%c0_36, %c0_37] : memref<1x32xf32, #tpu.memory_space<vmem>>, vector<1x32xf32>
    %57 = vector.broadcast %56 : vector<1x32xf32> to vector<8x32xf32>
    %58 = arith.addf %55, %57 : vector<8x32xf32>
    %59 = vector.broadcast %5 : vector<1x32xf32> to vector<8x32xf32>
    %60 = arith.mulf %59, %58 : vector<8x32xf32>
    %61 = arith.addf %32, %60 : vector<8x32xf32>
    %62 = vector.shape_cast %61 : vector<8x32xf32> to vector<1x8x32xf32>
    %c0_38 = arith.constant 0 : index
    %c0_39 = arith.constant 0 : index
    %c0_40 = arith.constant 0 : index
    %63 = vector.load %arg14[%c0_38, %c0_39, %c0_40] : memref<1x8x32xf32, #tpu.memory_space<vmem>>, vector<1x8x32xf32>
    tpu.vector_store %arg14[%c0_38, %c0_39, %c0_40], %62 {strides = array<i32>} : memref<1x8x32xf32, #tpu.memory_space<vmem>>, vector<1x8x32xf32>,
    return
  }
  func.func @transform_0(%arg0: i32) -> (i32, i32, i32) {
    %c0_i32 = arith.constant 0 : i32
    %c0_i32_0 = arith.constant 0 : i32
    %c0_i32_1 = arith.constant 0 : i32
    return %arg0, %c0_i32, %c0_i32_0 : i32, i32, i32
  }
  func.func @transform_1(%arg0: i32) -> (i32, i32) {
    %c0_i32 = arith.constant 0 : i32
    %c0_i32_0 = arith.constant 0 : i32
    %c0_i32_1 = arith.constant 0 : i32
    return %c0_i32, %c0_i32_0 : i32, i32
  }
  func.func @transform_2(%arg0: i32) -> (i32, i32) {
    %c0_i32 = arith.constant 0 : i32
    %c0_i32_0 = arith.constant 0 : i32
    %c0_i32_1 = arith.constant 0 : i32
    return %c0_i32, %c0_i32_0 : i32, i32
  }
  func.func @transform_3(%arg0: i32) -> (i32, i32) {
    %c0_i32 = arith.constant 0 : i32
    %c0_i32_0 = arith.constant 0 : i32
    %c0_i32_1 = arith.constant 0 : i32
    return %c0_i32, %c0_i32_0 : i32, i32
  }
  func.func @transform_4(%arg0: i32) -> (i32, i32) {
    %c0_i32 = arith.constant 0 : i32
    %c0_i32_0 = arith.constant 0 : i32
    %c0_i32_1 = arith.constant 0 : i32
    return %c0_i32, %c0_i32_0 : i32, i32
  }
  func.func @transform_5(%arg0: i32) -> (i32, i32) {
    %c0_i32 = arith.constant 0 : i32
    %c0_i32_0 = arith.constant 0 : i32
    %c0_i32_1 = arith.constant 0 : i32
    return %c0_i32, %c0_i32_0 : i32, i32
  }
  func.func @transform_6(%arg0: i32) -> (i32, i32) {
    %c0_i32 = arith.constant 0 : i32
    %c0_i32_0 = arith.constant 0 : i32
    %c0_i32_1 = arith.constant 0 : i32
    return %c0_i32, %c0_i32_0 : i32, i32
  }
  func.func @transform_7(%arg0: i32) -> (i32, i32, i32) {
    %c0_i32 = arith.constant 0 : i32
    %c0_i32_0 = arith.constant 0 : i32
    %c0_i32_1 = arith.constant 0 : i32
    %c0_i32_2 = arith.constant 0 : i32
    return %c0_i32, %c0_i32_0, %c0_i32_1 : i32, i32, i32
  }
  func.func @transform_8(%arg0: i32) -> (i32, i32, i32) {
    %c0_i32 = arith.constant 0 : i32
    %c0_i32_0 = arith.constant 0 : i32
    %c0_i32_1 = arith.constant 0 : i32
    %c0_i32_2 = arith.constant 0 : i32
    return %c0_i32, %c0_i32_0, %c0_i32_1 : i32, i32, i32
  }
  func.func @transform_9(%arg0: i32) -> (i32, i32, i32) {
    %c0_i32 = arith.constant 0 : i32
    %c0_i32_0 = arith.constant 0 : i32
    %c0_i32_1 = arith.constant 0 : i32
    %c0_i32_2 = arith.constant 0 : i32
    return %c0_i32, %c0_i32_0, %c0_i32_1 : i32, i32, i32
  }
  func.func @transform_10(%arg0: i32) -> (i32, i32) {
    %c0_i32 = arith.constant 0 : i32
    %c0_i32_0 = arith.constant 0 : i32
    %c0_i32_1 = arith.constant 0 : i32
    return %c0_i32, %c0_i32_0 : i32, i32
  }
  func.func @transform_11(%arg0: i32) -> (i32, i32) {
    %c0_i32 = arith.constant 0 : i32
    %c0_i32_0 = arith.constant 0 : i32
    %c0_i32_1 = arith.constant 0 : i32
    return %c0_i32, %c0_i32_0 : i32, i32
  }
  func.func @transform_12(%arg0: i32) -> (i32, i32) {
    %c0_i32 = arith.constant 0 : i32
    %c0_i32_0 = arith.constant 0 : i32
    %c0_i32_1 = arith.constant 0 : i32
    return %c0_i32, %c0_i32_0 : i32, i32
  }
  func.func @transform_13(%arg0: i32) -> (i32, i32, i32) {
    %c0_i32 = arith.constant 0 : i32
    %c0_i32_0 = arith.constant 0 : i32
    %c0_i32_1 = arith.constant 0 : i32
    return %arg0, %c0_i32, %c0_i32_0 : i32, i32, i32
  }
}

</mosaic_0001>

<bundles_post_ra>
// kernel: mlpblock_forward.1
= control target key start
LH: loop header
LB: loop body
LE: loop exit
PB: predicated region body
PF: predicated region fallthrough
CT: control target
= control target key end

     0   :  { %s1272_s0 = inlined_call_operand.vmem [shape: f32[2,8,32], index: 0, kind: input, shape index: {}]   ;;  %s1273_s1 = inlined_call_operand.vmem [shape: f32[1,32], index: 1, kind: input, shape index: {}]   ;;  %s1274_s2 = inlined_call_operand.vmem [shape: f32[1,32], index: 2, kind: input, shape index: {}]   ;;  %s1275_s3 = inlined_call_operand.vmem [shape: f32[8,8], index: 3, kind: input, shape index: {}]   ;;  %s1276_s4 = inlined_call_operand.vmem [shape: f32[8,1], index: 4, kind: input, shape index: {}]   ;;  %s1277_s5 = inlined_call_operand.vmem [shape: f32[1,32], index: 5, kind: input, shape index: {}]   ;;  %s1278_s6 = inlined_call_operand.vmem [shape: f32[1,32], index: 6, kind: input, shape index: {}]   ;;  %s1279_s7 = inlined_call_operand.vmem [shape: f32[1,32,64], index: 7, kind: input, shape index: {}]   ;;  %s1280_s8 = inlined_call_operand.vmem [shape: f32[1,1,64], index: 8, kind: input, shape index: {}]   ;;  %s1281_s9 = inlined_call_operand.vmem [shape: f32[1,64,32], index: 9, kind: input, shape index: {}]   ;;  %s1282_s10 = inlined_call_operand.vmem [shape: f32[1,32], index: 10, kind: input, shape index: {}]   ;;  %s1283_s11 = inlined_call_operand.vmem [shape: f32[1,32], index: 11, kind: input, shape index: {}]   ;;  %s1284_s12 = inlined_call_operand.vmem [shape: f32[1,32], index: 12, kind: input, shape index: {}]   ;;  %s1285_s13 = inlined_call_operand.hbm [shape: f32[2,8,32], index: 13, kind: output, shape index: {}]  }
   0x1   :  { %1287 = sst [smem:[#allocation8_spill]] %s1272_s0 }
   0x2   :  { %1288 = sst [smem:[#allocation9_spill]] %s1276_s4 }
   0x3   :  { %18 = vsyncpa [#allocation4], 0 }
   0x4   :  { %20 = vsyncpa [#allocation4 + $0x1], 0  ;;  %s1100_s25 = smov 0   ;;  %s1102_s26 = smov 0  }
   0x5   :  { %s1104_s27 = smov 0   ;;  %s1106_s28 = smov 0  }
   0x6 LB: > { %1289 = sst [smem:[#allocation6_spill]] %s1019_s27  ;;  %s1121_s29 = sadd.s32 4294967295, %s1023_s28   ;;  %s1023_s28 = sphi %s1106_s28, %s1299_s28   ;;  %s1019_s27 = sphi %s1104_s27, %s1296_s27   ;;  %s1015_s26 = sphi %s1102_s26, %s1298_s26   ;;  %s1011_s25 = sphi %s1100_s25, %s1297_s25  }
   0x7   : > { %s825_s30 = sadd.s32 4294967294, %s1023_s28   ;;  %s1125_s14 = sadd.s32 1, %s1023_s28  }
   0x8   : > { %s311_s15 = sadd.s32 1, %s1019_s27  ;;  %s308_s16 = ssub.s32 %s1023_s28, %s1125_s14 }
   0x9   : > { %p321_p0 = scmp.ne.s32.totalorder %s1019_s27, %s1015_s26  ;;  %p309_p1 = scmp.eq.s32.totalorder %s308_s16, 0 }
   0xa   : > { %p322_p2 = scmp.eq.s32.totalorder %s1121_s29, 1  ;;  %p327_p3 = scmp.ne.s32.totalorder %s1015_s26, %s1011_s25 }
   0xb   : > { %p328_p4 = scmp.eq.s32.totalorder %s825_s30, 1  ;;  %p828_p7 = scmp.ge.s32.totalorder %s1023_s28, 1 }
   0xc   : > { %s1136_s17 = scalar_select %p309_p1, %s1019_s27, %s311_s15  }
   0xd   : > { %p1138_p5 = por %p322_p2, %p321_p0  ;;  %p1142_p6 = por %p328_p4, %p327_p3 }
   0xe   : > { %1290 = sst [smem:[#allocation7_spill]] %s1136_s17  ;;  %p389_p8 = scmp.lt.s32.totalorder %s1023_s28, 3 }
  0x10   : > { %p390_p9 = pnand %p828_p7, %p389_p8 }
  0x11   : > { %p432_p10 = scmp.lt.s32.totalorder (!%p390_p9), %s1121_s29, 1  ;;  %v1025_v0 = vmov (!%p390_p9), 0.0   ;;  %s1293_s4 = sld [smem:[#allocation9_spill]] (!%p390_p9)  ;;  %vm1026_vm0 = vmmov (!%p390_p9), 0   ;;  %v1027_v2 = vmov (!%p390_p9), 0   ;;  %v442_v8 = vld [vmem:[%s1275_s3] sm:$0xff] (!%p390_p9) }
  0x12   : > { %393 = sbr.rel (%p390_p9) target bundleno = 728 (0x2d8), region = 72  ;;  %862 = vmatprep.subr.mxu1 (!%p390_p9), %v1025_v0  ;;  %864 = vmatprep.mubr.msk.f32.mxu1 (!%p390_p9), %vm1026_vm0, %v1025_v0  ;;  %v832_v3 = vld [vmem:[%s1273_s1] ss:$0 sm:$0xff] (!%p390_p9)  ;;  %s1294_s0 = sld [smem:[#allocation8_spill]] (!%p390_p9)  ;;  %vm471_vm1 = vcmask (!%p390_p9), 64512   ;;  %v566_v10 = vld [vmem:[%s1279_s7 + $0x8] sm:$0xff] (!%p390_p9) }
  0x13   : > { %958 = vset.pattern.permute.xlu0 (!%p390_p9), %v1027_v2  ;;  %894 = vmatprep.mubr.msk.f32.mxu0 (!%p390_p9), %vm1026_vm0, %v1025_v0  ;;  %v833_v4 = vld [vmem:[%s1274_s2] ss:$0 sm:$0xff] (!%p390_p9)  ;;  %v567_v11 = vld [vmem:[%s1279_s7 + $0x10] sm:$0xff] (!%p390_p9)  ;;  %v1028_v12 = vmov (!%p390_p9), 0.0|0.0   ;;  %v568_v14 = vld [vmem:[%s1279_s7 + $0x18] sm:$0xff] (!%p390_p9)  ;;  %vm562_vm2 = vcmask (!%p390_p9), 261120  }
  0x14   : > { %v565_v9 = vld [vmem:[%s1279_s7] sm:$0xff] (!%p390_p9)  ;;  %903 = vmatprep.subr.bf16.mxu0 (!%p390_p9), %v1028_v12  ;;  %v901_v15 = vpack.c.bf16 (!%p390_p9), %v568_v14, %v567_v11  ;;  %v655_v30 = vld [vmem:[%s1281_s9 + $0x8] sm:$0xff] (!%p390_p9)  ;;  %v656_v32 = vld [vmem:[%s1281_s9 + $0x10] sm:$0xff] (!%p390_p9)  ;;  %vm669_vm3 = vcmask (!%p390_p9), 523264   ;;  %s429_s21 = sand.u32 (!%p390_p9), 1, %s1015_s26   ;;  %s843_s15 = sshll.u32 (!%p390_p9), %s1121_s29, 7 }
  0x15   : > { %v898_v13 = vpack.c.bf16 (!%p390_p9), %v566_v10, %v565_v9  ;;  %v831_v16 = vld [vmem:[%s1283_s11] ss:$0 sm:$0xff] (!%p390_p9)  ;;  %v657_v33 = vld [vmem:[%s1281_s9 + $0x18] sm:$0xff] (!%p390_p9)  ;;  %v659_v36 = vld [vmem:[%s1281_s9 + $0x28] sm:$0xff] (!%p390_p9)  ;;  %s753_s24 = scalar_lea.sflag (!%p390_p9), [#allocation4], %s429_s21 }
  0x16   : > { %v835_v23 = vld [vmem:[%s1277_s5] ss:$0 sm:$0xff] (!%p390_p9)  ;;  %v907_v34 = vpack.c.bf16 (!%p390_p9), %v657_v33, %v656_v32  ;;  %v660_v38 = vld [vmem:[%s1281_s9 + $0x30] sm:$0xff] (!%p390_p9)  ;;  %v661_v39 = vld [vmem:[%s1281_s9 + $0x38] sm:$0xff] (!%p390_p9) }
  0x17   : > { %v443_v1 = vld [vmem:[%s1293_s4] sm:$0xff] (!%p390_p9)  ;;  %v913_v40 = vpack.c.bf16 (!%p390_p9), %v661_v39, %v660_v38 }
  0x18   : > { %452 = vperm.xlu0 (!%p390_p9), %958, %v443_v1   ;;  %v836_v25 = vld [vmem:[%s1278_s6] ss:$0 sm:$0xff] (!%p390_p9) }
  0x19   : > { %s433_s22 = scalar_select %p432_p10, %s1121_s29, 1  ;;  %v654_v29 = vld [vmem:[%s1281_s9] sm:$0xff] }
  0x1a   : > { %v904_v31 = vpack.c.bf16 %v655_v30, %v654_v29  ;;  %v658_v35 = vld [vmem:[%s1281_s9 + $0x20] sm:$0xff]  ;;  %s1029_s29 = smov [#allocation3]  }
  0x1b   : > { %s830_s23 = sshll.u32 %s433_s22, 3  ;;  %v910_v37 = vpack.c.bf16 %v659_v36, %v658_v35  ;;  %v837_v41 = vld [vmem:[%s1280_s8] ss:$0 sm:$0xff]  ;;  %s829_s22 = sshll.u32 %s429_s21, 3 }
  0x1c   : > { %s435_s17 = scalar_lea.vmem %s1294_s0, %s830_s23  ;;  %905 = vmatpush3.bf16.msra.mxu0 %v904_v31  ;;  %v839_v50 = vld [vmem:[%s1282_s10] ss:$0 sm:$0xff]  ;;  %s431_s4 = scalar_lea.vmem [#allocation3], %s829_s22 }
  0x1d   : > { %v456_v5 = vld [vmem:[%s435_s17] sm:$0xff]  ;;  %906 = vmatprep.subr.bf16.mxu0 %v1028_v12  ;;  %s766_s27 = sshll.u32 %s431_s4, 4  ;;  %s1229_s0 = scalar_lea.hbm %s1285_s13, %s843_s15  ;;  %s1231_s27 = int_to_ptr.vmem [resolvable:$true] %s766_s27 }
  0x1e   : > { %v463_v6 = vmul.f32 %v832_v3, %v456_v5  ;;  %v841_v51 = vld [vmem:[%s1284_s12] ss:$0 sm:$0xff]  ;;  %s961_s23 = scalar_lea.vmem %s1231_s27, 128  ;;  %s965_s22 = sshll.u32 %s1029_s29, 4  ;;  %s966_s22 = int_to_ptr.vmem [resolvable:$false] %s965_s22 }
  0x1f   : > { %p962_p11 = scmp.ne.s32.totalorder %s1231_s27, %s961_s23  ;;  %s967_s30 = scalar_lea.vmem %s966_s22, 256 }
  0x20   : > { %v470_v7 = vadd.f32 %v833_v4, %v463_v6  ;;  %908 = vmatpush3.bf16.msra.mxu0 %v907_v34  ;;  %p968_p0 = scmp.lt.s32.totalorder %s1231_s27, %s966_s22  ;;  %p969_p1 = scmp.lt.s32.totalorder %s967_s30, %s961_s23 }
  0x21   : > { %909 = vmatprep.subr.bf16.mxu0 %v1028_v12  ;;  %p963_p12 = pnand %p962_p11, %p1138_p5 }
  0x22   : > { %863 = vmatpush3.msra.mxu1 %v470_v7  ;;  %p970_p2 = por %p969_p1, %p968_p0 }
  0x23   : > { %865 = vmatmul.mubr.msk.f32.vlgmr.msra.gmra.mrb[0].mxu1 %vm471_vm1, %v442_v8  ;;  %897 = vmatprep.subr.bf16.mxu1 %v1028_v12  ;;  %p964_p13 = pneg %p963_p12 }
  0x24   : > { %875 = vmatprep.mubr.msk.f32.mxu1 %vm1026_vm0, %v1025_v0  ;;  %899 = vmatpush3.bf16.msra.mxu1 %v898_v13 }
  0x25   : > { %900 = vmatprep.subr.bf16.mxu1 %v1028_v12  ;;  %911 = vmatpush3.bf16.msra.mxu0 %v910_v37  ;;  %p971_p3 = pnand %p970_p2, %p964_p13 }
  0x26   : > { %912 = vmatprep.subr.bf16.mxu0 %v1028_v12 }
  0x28   : > { %902 = vmatpush3.bf16.msra.mxu1 %v901_v15 }
  0x29   : > { %914 = vmatpush3.bf16.msra.mxu0 %v913_v40 }
  0x97   : > { %v453_v17 = vpop.permute.xlu0 %452 }
  0x98   : > { %v455_v21 = vmul.f32 %v831_v16, %v453_v17 }
  0xf6   : > { %v541_v18 = vpop.f32.mrb[0].mxu1 }
  0xf7   : > { %v545_v19 = vmul.f32 %v831_v16, %v541_v18  ;;  %v866_v20 = vpop.f32.mrb[1].mxu1 }
  0xf9   : > { %v546_v22 = vadd.f32 %v545_v19, %v470_v7 }
  0xfb   : > { %v547_v24 = vadd.f32 %v546_v22, %v455_v21 }
  0xfd   : > { %v554_v26 = vmul.f32 %v835_v23, %v547_v24 }
  0xff   : > { %v561_v27 = vadd.f32 %v836_v25, %v554_v26 }
 0x101   : > { %563 = vst.msk [vmem:[#allocation2] sm:$0xff] %vm562_vm2, %v561_v27 }
 0x108   : > { %v564_v28 = vld [vmem:[#allocation2] sm:$0xff] }
 0x109   : > { %876 = vmatmul.mubr.msk.f32.vlgmr.msra.gmra.mrb[2].mxu1 %vm562_vm2, %v564_v28 }
 0x1dc   : > { %v645_v42 = vpop.f32.mrb[2].mxu1 }
 0x1dd   : > { %v646_v43 = vadd.f32 %v837_v41, %v645_v42  ;;  %v877_v44 = vpop.f32.mrb[3].mxu1 }
 0x1df   : > { %v650_v45 = vmul.f32 0.70710677, %v646_v43  ;;  %v649_v47 = vmul.f32 0.5, %v646_v43 }
 0x1e1   : > { %959 = verf.f32 %v650_v45 }
 0x1eb   : > { %v960_v46 = vpop.eup %959 }
 0x1ec   : > { %v652_v48 = vadd.f32 1.0, %v960_v46 }
 0x1ee   : > { %v653_v49 = vmul.f32 %v652_v48, %v649_v47 }
 0x1f0   : > { %895 = vmatmul.mubr.msk.f32.vlgmr.msra.gmra.mrb[0].mxu0 %vm669_vm3, %v653_v49 }
 0x2c3   : > { %v739_v52 = vpop.f32.mrb[0].mxu0 }
 0x2c4   : > { %v740_v53 = vadd.f32 %v839_v50, %v739_v52  ;;  %v896_v54 = vpop.f32.mrb[1].mxu0 }
 0x2c6   : > { %v749_v55 = vmul.f32 %v841_v51, %v740_v53 }
 0x2c8   : > { %v750_v56 = vadd.f32 %v749_v55, %v564_v28 }
 0x2ca   : > { %751 = vst.msk [vmem:[%s431_s4] sm:$0xff] %vm562_vm2, %v750_v56 }
 0x2cb   : > { %974 = shalt.err (!%p971_p3)
}
 0x2cc   : > { %s975_s21 = scalar_lea.hbm %s1229_s0, 128  ;;  %s979_s4 = scalar_lea.hbm %s1285_s13, 256 }
 0x2cd   : > { %p976_p4 = scmp.ne.s32.totalorder %s1229_s0, %s975_s21  ;;  %p980_p9 = scmp.lt.u32.totalorder %s1229_s0, %s1285_s13 }
 0x2ce   : > { %p981_p10 = scmp.lt.u32.totalorder %s979_s4, %s975_s21  ;;  %p983_p12 = scmp.lt.u32.totalorder %s975_s21, %s1229_s0 }
 0x2cf   : > { %p977_p7 = pnand %p976_p4, %p1138_p5 }
 0x2d0   : > { %p982_p11 = por %p981_p10, %p980_p9 }
 0x2d1   : > { %p978_p8 = pneg %p977_p7 }
 0x2d2   : > { %p984_p13 = por %p983_p12, %p982_p11 }
 0x2d4   : > { %p985_p0 = pnand %p984_p13, %p978_p8 }
 0x2d6   : > { %988 = shalt.err (!%p985_p0)
}
 0x2d7   : > { %915 = dma.vmem_to_hbm [thread:$0]  (%p1138_p5), %s1231_s27, 128, %s1229_s0, %s753_s24  }
 0x2d8 PF: > { %p921_p1 = scmp.ge.s32.totalorder %s1023_s28, 2  ;;  %s778_s23 = sand.u32 1, %s1011_s25  }
 0x2d9   : > { %s779_s29 = scalar_lea.sflag [#allocation4], %s778_s23 }
 0x2da   : > { %p918_p2 = pnand %p921_p1, %p1142_p6 }
 0x2dc   : > { %1006 = dma.done.wait (!%p918_p2), %s779_s29, 128  }
 0x2dd   : > { %1008 = vsyncadd (!%p918_p2), %s779_s29, 4294967168  ;;  %s1295_s22 = sld [smem:[#allocation6_spill]]  ;;  %s1296_s27 = sld [smem:[#allocation7_spill]] }
 0x2de   : > { %p23_p3 = scmp.ge.s32.totalorder %s1125_s14, 4   ;;  %s1297_s25 = smov %s1015_s26 }
 0x2df   : > { %s1299_s28 = smov %s1125_s14 }
 0x2e0   :  { %25 = sbr.rel (!%p23_p3) target bundleno = 6 (0x6), region = 107 }
 0x2e3   : > { %s1298_s26 = smov %s1295_s22 }
 0x2e7   :  { %784 = vsyncpa [#allocation4], 1 }
 0x2e8   :  { %786 = vsyncpa [#allocation4 + $0x1], 1 }

// kernel: mlpblock_forward.1
= control target key start
LH: loop header
LB: loop body
LE: loop exit
PB: predicated region body
PF: predicated region fallthrough
CT: control target
= control target key end

     0   :  { %s1272_s0 = inlined_call_operand.vmem [shape: f32[2,8,32], index: 0, kind: input, shape index: {}]   ;;  %s1273_s1 = inlined_call_operand.vmem [shape: f32[1,32], index: 1, kind: input, shape index: {}]   ;;  %s1274_s2 = inlined_call_operand.vmem [shape: f32[1,32], index: 2, kind: input, shape index: {}]   ;;  %s1275_s3 = inlined_call_operand.vmem [shape: f32[8,8], index: 3, kind: input, shape index: {}]   ;;  %s1276_s4 = inlined_call_operand.vmem [shape: f32[8,1], index: 4, kind: input, shape index: {}]   ;;  %s1277_s5 = inlined_call_operand.vmem [shape: f32[1,32], index: 5, kind: input, shape index: {}]   ;;  %s1278_s6 = inlined_call_operand.vmem [shape: f32[1,32], index: 6, kind: input, shape index: {}]   ;;  %s1279_s7 = inlined_call_operand.vmem [shape: f32[1,32,64], index: 7, kind: input, shape index: {}]   ;;  %s1280_s8 = inlined_call_operand.vmem [shape: f32[1,1,64], index: 8, kind: input, shape index: {}]   ;;  %s1281_s9 = inlined_call_operand.vmem [shape: f32[1,64,32], index: 9, kind: input, shape index: {}]   ;;  %s1282_s10 = inlined_call_operand.vmem [shape: f32[1,32], index: 10, kind: input, shape index: {}]   ;;  %s1283_s11 = inlined_call_operand.vmem [shape: f32[1,32], index: 11, kind: input, shape index: {}]   ;;  %s1284_s12 = inlined_call_operand.vmem [shape: f32[1,32], index: 12, kind: input, shape index: {}]   ;;  %s1285_s13 = inlined_call_operand.hbm [shape: f32[2,8,32], index: 13, kind: output, shape index: {}]  }
   0x1   :  { %1287 = sst [smem:[#allocation8_spill]] %s1272_s0 }
   0x2   :  { %1288 = sst [smem:[#allocation9_spill]] %s1276_s4 }
   0x3   :  { %18 = vsyncpa [#allocation4], 0 }
   0x4   :  { %20 = vsyncpa [#allocation4 + $0x1], 0  ;;  %s1100_s25 = smov 0   ;;  %s1102_s26 = smov 0  }
   0x5   :  { %s1104_s27 = smov 0   ;;  %s1106_s28 = smov 0  }
   0x6 LB: > { %1289 = sst [smem:[#allocation6_spill]] %s1019_s27  ;;  %s1121_s29 = sadd.s32 4294967295, %s1023_s28   ;;  %s1023_s28 = sphi %s1106_s28, %s1299_s28   ;;  %s1019_s27 = sphi %s1104_s27, %s1296_s27   ;;  %s1015_s26 = sphi %s1102_s26, %s1298_s26   ;;  %s1011_s25 = sphi %s1100_s25, %s1297_s25  }
   0x7   : > { %s825_s30 = sadd.s32 4294967294, %s1023_s28   ;;  %s1125_s14 = sadd.s32 1, %s1023_s28  }
   0x8   : > { %s311_s15 = sadd.s32 1, %s1019_s27  ;;  %s308_s16 = ssub.s32 %s1023_s28, %s1125_s14 }
   0x9   : > { %p321_p0 = scmp.ne.s32.totalorder %s1019_s27, %s1015_s26  ;;  %p309_p1 = scmp.eq.s32.totalorder %s308_s16, 0 }
   0xa   : > { %p322_p2 = scmp.eq.s32.totalorder %s1121_s29, 1  ;;  %p327_p3 = scmp.ne.s32.totalorder %s1015_s26, %s1011_s25 }
   0xb   : > { %p328_p4 = scmp.eq.s32.totalorder %s825_s30, 1  ;;  %p828_p7 = scmp.ge.s32.totalorder %s1023_s28, 1 }
   0xc   : > { %s1136_s17 = scalar_select %p309_p1, %s1019_s27, %s311_s15  }
   0xd   : > { %p1138_p5 = por %p322_p2, %p321_p0  ;;  %p1142_p6 = por %p328_p4, %p327_p3 }
   0xe   : > { %1290 = sst [smem:[#allocation7_spill]] %s1136_s17  ;;  %p389_p8 = scmp.lt.s32.totalorder %s1023_s28, 3 }
  0x10   : > { %p390_p9 = pnand %p828_p7, %p389_p8 }
  0x11   : > { %p432_p10 = scmp.lt.s32.totalorder (!%p390_p9), %s1121_s29, 1  ;;  %v1025_v0 = vmov (!%p390_p9), 0.0   ;;  %s1293_s4 = sld [smem:[#allocation9_spill]] (!%p390_p9)  ;;  %vm1026_vm0 = vmmov (!%p390_p9), 0   ;;  %v1027_v2 = vmov (!%p390_p9), 0   ;;  %v442_v8 = vld [vmem:[%s1275_s3] sm:$0xff] (!%p390_p9) }
  0x12   : > { %393 = sbr.rel (%p390_p9) target bundleno = 728 (0x2d8), region = 72  ;;  %862 = vmatprep.subr.mxu1 (!%p390_p9), %v1025_v0  ;;  %864 = vmatprep.mubr.msk.f32.mxu1 (!%p390_p9), %vm1026_vm0, %v1025_v0  ;;  %v832_v3 = vld [vmem:[%s1273_s1] ss:$0 sm:$0xff] (!%p390_p9)  ;;  %s1294_s0 = sld [smem:[#allocation8_spill]] (!%p390_p9)  ;;  %vm471_vm1 = vcmask (!%p390_p9), 64512   ;;  %v566_v10 = vld [vmem:[%s1279_s7 + $0x8] sm:$0xff] (!%p390_p9) }
  0x13   : > { %958 = vset.pattern.permute.xlu0 (!%p390_p9), %v1027_v2  ;;  %894 = vmatprep.mubr.msk.f32.mxu0 (!%p390_p9), %vm1026_vm0, %v1025_v0  ;;  %v833_v4 = vld [vmem:[%s1274_s2] ss:$0 sm:$0xff] (!%p390_p9)  ;;  %v567_v11 = vld [vmem:[%s1279_s7 + $0x10] sm:$0xff] (!%p390_p9)  ;;  %v1028_v12 = vmov (!%p390_p9), 0.0|0.0   ;;  %v568_v14 = vld [vmem:[%s1279_s7 + $0x18] sm:$0xff] (!%p390_p9)  ;;  %vm562_vm2 = vcmask (!%p390_p9), 261120  }
  0x14   : > { %v565_v9 = vld [vmem:[%s1279_s7] sm:$0xff] (!%p390_p9)  ;;  %903 = vmatprep.subr.bf16.mxu0 (!%p390_p9), %v1028_v12  ;;  %v901_v15 = vpack.c.bf16 (!%p390_p9), %v568_v14, %v567_v11  ;;  %v655_v30 = vld [vmem:[%s1281_s9 + $0x8] sm:$0xff] (!%p390_p9)  ;;  %v656_v32 = vld [vmem:[%s1281_s9 + $0x10] sm:$0xff] (!%p390_p9)  ;;  %vm669_vm3 = vcmask (!%p390_p9), 523264   ;;  %s429_s21 = sand.u32 (!%p390_p9), 1, %s1015_s26   ;;  %s843_s15 = sshll.u32 (!%p390_p9), %s1121_s29, 7 }
  0x15   : > { %v898_v13 = vpack.c.bf16 (!%p390_p9), %v566_v10, %v565_v9  ;;  %v831_v16 = vld [vmem:[%s1283_s11] ss:$0 sm:$0xff] (!%p390_p9)  ;;  %v657_v33 = vld [vmem:[%s1281_s9 + $0x18] sm:$0xff] (!%p390_p9)  ;;  %v659_v36 = vld [vmem:[%s1281_s9 + $0x28] sm:$0xff] (!%p390_p9)  ;;  %s753_s24 = scalar_lea.sflag (!%p390_p9), [#allocation4], %s429_s21 }
  0x16   : > { %v835_v23 = vld [vmem:[%s1277_s5] ss:$0 sm:$0xff] (!%p390_p9)  ;;  %v907_v34 = vpack.c.bf16 (!%p390_p9), %v657_v33, %v656_v32  ;;  %v660_v38 = vld [vmem:[%s1281_s9 + $0x30] sm:$0xff] (!%p390_p9)  ;;  %v661_v39 = vld [vmem:[%s1281_s9 + $0x38] sm:$0xff] (!%p390_p9) }
  0x17   : > { %v443_v1 = vld [vmem:[%s1293_s4] sm:$0xff] (!%p390_p9)  ;;  %v913_v40 = vpack.c.bf16 (!%p390_p9), %v661_v39, %v660_v38 }
  0x18   : > { %452 = vperm.xlu0 (!%p390_p9), %958, %v443_v1   ;;  %v836_v25 = vld [vmem:[%s1278_s6] ss:$0 sm:$0xff] (!%p390_p9) }
  0x19   : > { %s433_s22 = scalar_select %p432_p10, %s1121_s29, 1  ;;  %v654_v29 = vld [vmem:[%s1281_s9] sm:$0xff] }
  0x1a   : > { %v904_v31 = vpack.c.bf16 %v655_v30, %v654_v29  ;;  %v658_v35 = vld [vmem:[%s1281_s9 + $0x20] sm:$0xff]  ;;  %s1029_s29 = smov [#allocation3]  }
  0x1b   : > { %s830_s23 = sshll.u32 %s433_s22, 3  ;;  %v910_v37 = vpack.c.bf16 %v659_v36, %v658_v35  ;;  %v837_v41 = vld [vmem:[%s1280_s8] ss:$0 sm:$0xff]  ;;  %s829_s22 = sshll.u32 %s429_s21, 3 }
  0x1c   : > { %s435_s17 = scalar_lea.vmem %s1294_s0, %s830_s23  ;;  %905 = vmatpush3.bf16.msra.mxu0 %v904_v31  ;;  %v839_v50 = vld [vmem:[%s1282_s10] ss:$0 sm:$0xff]  ;;  %s431_s4 = scalar_lea.vmem [#allocation3], %s829_s22 }
  0x1d   : > { %v456_v5 = vld [vmem:[%s435_s17] sm:$0xff]  ;;  %906 = vmatprep.subr.bf16.mxu0 %v1028_v12  ;;  %s766_s27 = sshll.u32 %s431_s4, 4  ;;  %s1229_s0 = scalar_lea.hbm %s1285_s13, %s843_s15  ;;  %s1231_s27 = int_to_ptr.vmem [resolvable:$true] %s766_s27 }
  0x1e   : > { %v463_v6 = vmul.f32 %v832_v3, %v456_v5  ;;  %v841_v51 = vld [vmem:[%s1284_s12] ss:$0 sm:$0xff]  ;;  %s961_s23 = scalar_lea.vmem %s1231_s27, 128  ;;  %s965_s22 = sshll.u32 %s1029_s29, 4  ;;  %s966_s22 = int_to_ptr.vmem [resolvable:$false] %s965_s22 }
  0x1f   : > { %p962_p11 = scmp.ne.s32.totalorder %s1231_s27, %s961_s23  ;;  %s967_s30 = scalar_lea.vmem %s966_s22, 256 }
  0x20   : > { %v470_v7 = vadd.f32 %v833_v4, %v463_v6  ;;  %908 = vmatpush3.bf16.msra.mxu0 %v907_v34  ;;  %p968_p0 = scmp.lt.s32.totalorder %s1231_s27, %s966_s22  ;;  %p969_p1 = scmp.lt.s32.totalorder %s967_s30, %s961_s23 }
  0x21   : > { %909 = vmatprep.subr.bf16.mxu0 %v1028_v12  ;;  %p963_p12 = pnand %p962_p11, %p1138_p5 }
  0x22   : > { %863 = vmatpush3.msra.mxu1 %v470_v7  ;;  %p970_p2 = por %p969_p1, %p968_p0 }
  0x23   : > { %865 = vmatmul.mubr.msk.f32.vlgmr.msra.gmra.mrb[0].mxu1 %vm471_vm1, %v442_v8  ;;  %897 = vmatprep.subr.bf16.mxu1 %v1028_v12  ;;  %p964_p13 = pneg %p963_p12 }
  0x24   : > { %875 = vmatprep.mubr.msk.f32.mxu1 %vm1026_vm0, %v1025_v0  ;;  %899 = vmatpush3.bf16.msra.mxu1 %v898_v13 }
  0x25   : > { %900 = vmatprep.subr.bf16.mxu1 %v1028_v12  ;;  %911 = vmatpush3.bf16.msra.mxu0 %v910_v37  ;;  %p971_p3 = pnand %p970_p2, %p964_p13 }
  0x26   : > { %912 = vmatprep.subr.bf16.mxu0 %v1028_v12 }
  0x28   : > { %902 = vmatpush3.bf16.msra.mxu1 %v901_v15 }
  0x29   : > { %914 = vmatpush3.bf16.msra.mxu0 %v913_v40 }
  0x97   : > { %v453_v17 = vpop.permute.xlu0 %452 }
  0x98   : > { %v455_v21 = vmul.f32 %v831_v16, %v453_v17 }
  0xf6   : > { %v541_v18 = vpop.f32.mrb[0].mxu1 }
  0xf7   : > { %v545_v19 = vmul.f32 %v831_v16, %v541_v18  ;;  %v866_v20 = vpop.f32.mrb[1].mxu1 }
  0xf9   : > { %v546_v22 = vadd.f32 %v545_v19, %v470_v7 }
  0xfb   : > { %v547_v24 = vadd.f32 %v546_v22, %v455_v21 }
  0xfd   : > { %v554_v26 = vmul.f32 %v835_v23, %v547_v24 }
  0xff   : > { %v561_v27 = vadd.f32 %v836_v25, %v554_v26 }
 0x101   : > { %563 = vst.msk [vmem:[#allocation2] sm:$0xff] %vm562_vm2, %v561_v27 }
 0x108   : > { %v564_v28 = vld [vmem:[#allocation2] sm:$0xff] }
 0x109   : > { %876 = vmatmul.mubr.msk.f32.vlgmr.msra.gmra.mrb[2].mxu1 %vm562_vm2, %v564_v28 }
 0x1dc   : > { %v645_v42 = vpop.f32.mrb[2].mxu1 }
 0x1dd   : > { %v646_v43 = vadd.f32 %v837_v41, %v645_v42  ;;  %v877_v44 = vpop.f32.mrb[3].mxu1 }
 0x1df   : > { %v650_v45 = vmul.f32 0.70710677, %v646_v43  ;;  %v649_v47 = vmul.f32 0.5, %v646_v43 }
 0x1e1   : > { %959 = verf.f32 %v650_v45 }
 0x1eb   : > { %v960_v46 = vpop.eup %959 }
 0x1ec   : > { %v652_v48 = vadd.f32 1.0, %v960_v46 }
 0x1ee   : > { %v653_v49 = vmul.f32 %v652_v48, %v649_v47 }
 0x1f0   : > { %895 = vmatmul.mubr.msk.f32.vlgmr.msra.gmra.mrb[0].mxu0 %vm669_vm3, %v653_v49 }
 0x2c3   : > { %v739_v52 = vpop.f32.mrb[0].mxu0 }
 0x2c4   : > { %v740_v53 = vadd.f32 %v839_v50, %v739_v52  ;;  %v896_v54 = vpop.f32.mrb[1].mxu0 }
 0x2c6   : > { %v749_v55 = vmul.f32 %v841_v51, %v740_v53 }
 0x2c8   : > { %v750_v56 = vadd.f32 %v749_v55, %v564_v28 }
 0x2ca   : > { %751 = vst.msk [vmem:[%s431_s4] sm:$0xff] %vm562_vm2, %v750_v56 }
 0x2cb   : > { %974 = shalt.err (!%p971_p3)
}
 0x2cc   : > { %s975_s21 = scalar_lea.hbm %s1229_s0, 128  ;;  %s979_s4 = scalar_lea.hbm %s1285_s13, 256 }
 0x2cd   : > { %p976_p4 = scmp.ne.s32.totalorder %s1229_s0, %s975_s21  ;;  %p980_p9 = scmp.lt.u32.totalorder %s1229_s0, %s1285_s13 }
 0x2ce   : > { %p981_p10 = scmp.lt.u32.totalorder %s979_s4, %s975_s21  ;;  %p983_p12 = scmp.lt.u32.totalorder %s975_s21, %s1229_s0 }
 0x2cf   : > { %p977_p7 = pnand %p976_p4, %p1138_p5 }
 0x2d0   : > { %p982_p11 = por %p981_p10, %p980_p9 }
 0x2d1   : > { %p978_p8 = pneg %p977_p7 }
 0x2d2   : > { %p984_p13 = por %p983_p12, %p982_p11 }
 0x2d4   : > { %p985_p0 = pnand %p984_p13, %p978_p8 }
 0x2d6   : > { %988 = shalt.err (!%p985_p0)
}
 0x2d7   : > { %915 = dma.vmem_to_hbm [thread:$0]  (%p1138_p5), %s1231_s27, 128, %s1229_s0, %s753_s24  }
 0x2d8 PF: > { %p921_p1 = scmp.ge.s32.totalorder %s1023_s28, 2  ;;  %s778_s23 = sand.u32 1, %s1011_s25  }
 0x2d9   : > { %s779_s29 = scalar_lea.sflag [#allocation4], %s778_s23 }
 0x2da   : > { %p918_p2 = pnand %p921_p1, %p1142_p6 }
 0x2dc   : > { %1006 = dma.done.wait (!%p918_p2), %s779_s29, 128  }
 0x2dd   : > { %1008 = vsyncadd (!%p918_p2), %s779_s29, 4294967168  ;;  %s1295_s22 = sld [smem:[#allocation6_spill]]  ;;  %s1296_s27 = sld [smem:[#allocation7_spill]] }
 0x2de   : > { %p23_p3 = scmp.ge.s32.totalorder %s1125_s14, 4   ;;  %s1297_s25 = smov %s1015_s26 }
 0x2df   : > { %s1299_s28 = smov %s1125_s14 }
 0x2e0   :  { %25 = sbr.rel (!%p23_p3) target bundleno = 6 (0x6), region = 107 }
 0x2e3   : > { %s1298_s26 = smov %s1295_s22 }
 0x2e7   :  { %784 = vsyncpa [#allocation4], 1 }
 0x2e8   :  { %786 = vsyncpa [#allocation4 + $0x1], 1 }

</bundles_post_ra>
